<compile_context>
chip_gen: v6e
topology: v6e:2x2x1
jax: 0.10.0
libtpu: 0.0.40
codegen_flags: <defaults>
</compile_context>

<pallas_src>
from typing import NamedTuple

import jax
import jax.numpy as jnp
from jax.experimental import pallas as pl
from jax.experimental.pallas import tpu as pltpu


# ----------------------------------------------------------------------------
# Kernel: per-core partial back-projection r_c = (x @ A_c^T - proj_c) @ A_c
# ----------------------------------------------------------------------------
def fidelity_r_kernel(x_ref, proj_ref, s_ref, a_ref, r_ref, r_acc):
    """One (core, M-tile) step of the fused gradient step.

    x_ref   : (B, N_pad)   bf16  resident across the grid (pre-cast in wrapper)
    proj_ref: (B, TM)      f32   tile of the sinogram
    s_ref   : (1, TM)      f32   per-row dequant scale of A
    a_ref   : (TM, N_pad)  int8  streamed tile of the quantized system matrix
    r_ref   : (B, N_pad)   f32   per-core partial back-projection (written last)
    r_acc   : (B, N_pad)   f32   VMEM scratch accumulator
    """
    m = pl.program_id(1)

    @pl.when(m == 0)
    def _init():
        r_acc[...] = jnp.zeros_like(r_acc)

    a = a_ref[...].astype(jnp.bfloat16)          # int8 -> bf16 dequant (unscaled)
    s = s_ref[...]                               # (1, TM) row scales

    # forward projection tile: (B, N) x (TM, N)^T -> (B, TM), f32 accumulate
    sino_q = jax.lax.dot_general(
        x_ref[...], a, (((1,), (1,)), ((), ())),
        preferred_element_type=jnp.float32)
    temp = sino_q * s - proj_ref[...]            # apply A row scale (P) then subtract proj
    temp_s = (temp * s).astype(jnp.bfloat16)     # apply row scale again for P^T

    # back projection partial: (B, TM) x (TM, N) -> (B, N), accumulated in f32
    r_acc[...] += jnp.dot(temp_s, a, preferred_element_type=jnp.float32)

    @pl.when(m == pl.num_programs(1) - 1)
    def _finalize():
        r_ref[...] = r_acc[...]


# ----------------------------------------------------------------------------
# Operator preparation (done once, outside the per-call path)
# ----------------------------------------------------------------------------
def _round_up(x, m):
    return (x + m - 1) // m * m


def _default_vmem_limit_bytes():
    """Generation-aware scoped-VMEM limit (96 MiB on 128 MiB parts, 48 MiB on v7x)."""
    cap = 64 * 1024 * 1024
    try:
        info = pltpu.get_tpu_info()
        cap = int(getattr(info, "vmem_capacity_bytes", cap))
    except Exception:
        pass
    return min(int(cap * 3 // 4), 100 * 1024 * 1024)


def _choose_tm(n_pad, m, n_cores, vmem_limit_bytes, b_hint=8):
    """Largest multiple-of-128 M-tile whose double-buffered int8 A tiles fit the budget."""
    # resident VMEM: bf16 x + f32 r_acc + f32 out block (pessimistically 2 buffers)
    resident = b_hint * n_pad * (2 + 4 + 2 * 4)
    a_budget = max(vmem_limit_bytes - resident - (2 << 20), 4 << 20)
    # per 128 A rows, double buffered: int8 A tile + f32 proj tile + f32 scale tile
    per_128 = 2 * 128 * (n_pad + (b_hint + 1) * 4)
    tm = max(1, a_budget // per_128) * 128
    per_core = _round_up((m + n_cores - 1) // n_cores, 128)
    return int(max(128, min(tm, per_core)))


class FidelityOperator(NamedTuple):
    a_q: jnp.ndarray      # (M_pad, N_pad) int8 quantized system matrix
    scale: jnp.ndarray    # (1, M_pad) f32 per-row dequant scale
    M: int
    N: int
    M_pad: int
    N_pad: int
    tm: int
    n_cores: int
    vmem_limit_bytes: int


def prepare_fidelity_operator(A, *, n_cores=2, tm=None, vmem_limit_bytes=None):
    """Pad + quantize the system matrix once (8-bit per-row), pick the M tile."""
    A = jnp.asarray(A, jnp.float32)
    M, N = A.shape
    N_pad = _round_up(N, 128)
    if vmem_limit_bytes is None:
        vmem_limit_bytes = _default_vmem_limit_bytes()
    if tm is None:
        tm = _choose_tm(N_pad, M, n_cores, vmem_limit_bytes)
    tm = max(128, (int(tm) // 128) * 128)
    M_pad = _round_up(M, n_cores * tm)

    A_pad = jnp.pad(A, ((0, M_pad - M), (0, N_pad - N)))
    amax = jnp.max(jnp.abs(A_pad), axis=1, keepdims=True)        # (M_pad, 1)
    scale = jnp.maximum(amax / 127.0, jnp.float32(1e-30))
    a_q = jnp.clip(jnp.round(A_pad / scale), -127.0, 127.0).astype(jnp.int8)

    return FidelityOperator(
        a_q=a_q,
        scale=scale.reshape(1, M_pad).astype(jnp.float32),
        M=int(M), N=int(N), M_pad=int(M_pad), N_pad=int(N_pad),
        tm=int(tm), n_cores=int(n_cores),
        vmem_limit_bytes=int(vmem_limit_bytes))


# ----------------------------------------------------------------------------
# Forward pass: out = x - weight * P^T(P(x) - proj)
# ----------------------------------------------------------------------------
def fidelity_pallas(x_img, proj, op: FidelityOperator, weight):
    """x_img: (B, 1, H, W), proj: (B, 1, V, D), op: prepared operator, weight: scalar."""
    B, C, H, W = x_img.shape
    _, _, V, D = proj.shape
    N = C * H * W
    M = C * V * D
    assert N == op.N and M == op.M, "operator shape mismatch"

    x_flat = x_img.reshape(B, N).astype(jnp.float32)
    proj_flat = proj.reshape(B, M).astype(jnp.float32)

    x_pad = jnp.pad(x_flat, ((0, 0), (0, op.N_pad - N))) if op.N_pad != N else x_flat
    proj_pad = (jnp.pad(proj_flat, ((0, 0), (0, op.M_pad - M)))
                if op.M_pad != M else proj_flat)

    x_bf = x_pad.astype(jnp.bfloat16)            # hoisted once; resident in VMEM

    nc, tm, n_pad = op.n_cores, op.tm, op.N_pad
    steps = op.M_pad // (nc * tm)                # inner M steps per core

    r_parts = pl.pallas_call(
        fidelity_r_kernel,
        out_shape=jax.ShapeDtypeStruct((nc, B, n_pad), jnp.float32),
        grid=(nc, steps),
        in_specs=[
            pl.BlockSpec((B, n_pad), lambda c, m: (0, 0)),            # x (bf16, resident)
            pl.BlockSpec((B, tm), lambda c, m: (0, c * steps + m)),   # proj tile
            pl.BlockSpec((1, tm), lambda c, m: (0, c * steps + m)),   # A row-scale tile
            pl.BlockSpec((tm, n_pad), lambda c, m: (c * steps + m, 0)),  # int8 A tile
        ],
        out_specs=pl.BlockSpec((None, B, n_pad), lambda c, m: (c, 0, 0)),  # per-core r
        scratch_shapes=[pltpu.VMEM((B, n_pad), jnp.float32)],              # r accumulator
        compiler_params=pltpu.CompilerParams(
            dimension_semantics=("parallel", "arbitrary"),
            vmem_limit_bytes=op.vmem_limit_bytes,
        ),
    )(x_bf, proj_pad, op.scale, op.a_q)

    # Cheap XLA epilogue: combine per-core partials and take the gradient step.
    r = jnp.sum(r_parts, axis=0)                                   # (B, N_pad)
    out = x_pad - jnp.asarray(weight, jnp.float32) * r
    return out[:, :N].reshape(B, C, H, W)


# ----------------------------------------------------------------------------
# Synthetic geometry + pure-JAX reference
# ----------------------------------------------------------------------------
def make_system_matrix(options):
    """Deterministic synthetic CT system matrix derived from the geometry options.

    options = [views, dets, width, height, dImg, dDet, Ang0, dAng, s2r, d2r,
               binshift, scan_type]  (same convention ctlib uses).
    """
    views = int(options[0])
    dets = int(options[1])
    width = int(options[2])
    height = int(options[3])
    M = views * dets
    N = width * height
    m = jnp.arange(M, dtype=jnp.float32)[:, None]
    n = jnp.arange(N, dtype=jnp.float32)[None, :]
    # smooth, deterministic ray-weight pattern (stands in for ray-pixel lengths)
    A = (jnp.cos(0.05 * m * (n % 17 + 1) / (N ** 0.5)) *
         jnp.exp(-4.0 * (m / M - n / N) ** 2)) / jnp.float32(N)
    return A.astype(jnp.float32)


def fidelity_ref(x_img, proj, A, weight):
    """Pure-JAX f32 reference (exact A) for correctness check."""
    B, C, H, W = x_img.shape
    x = x_img.reshape(B, -1)
    p = proj.reshape(B, -1)
    sino = x @ A.T
    r = (sino - p) @ A
    out = x - weight * r
    return out.reshape(B, C, H, W)


if __name__ == "__main__":
    key = jax.random.PRNGKey(0)
    k1, k2 = jax.random.split(key)

    # geometry options (deterministic, small): 32 views, 16 detector bins, 16x16 image
    views, dets, W, H = 32, 16, 16, 16
    B = 2
    options = jnp.array([views, dets, W, H, 0.025, 0.05, 0.0, 0.785, 2.5, 2.5, 0.0, 0.0],
                        dtype=jnp.float32)

    x_img = jax.random.normal(k1, (B, 1, H, W), dtype=jnp.float32)
    proj = jax.random.normal(k2, (B, 1, views, dets), dtype=jnp.float32)
    A = make_system_matrix(options)          # (512, 256)
    weight = jnp.float32(0.1)                # deterministic init of nn.Parameter

    # tm=128 with n_cores=2 gives a (2, 2) grid so both the core split and the
    # init / accumulate / finalize path over M are exercised.
    op = prepare_fidelity_operator(A, n_cores=2, tm=128)
    out = fidelity_pallas(x_img, proj, op, weight)
    out = jax.block_until_ready(out)

    ref = fidelity_ref(x_img, proj, A, weight)
    assert out.shape == (B, 1, H, W)
    max_err = float(jnp.max(jnp.abs(out - ref)))
    # tolerance relaxed vs a pure-f32 version: A is int8 (per-row scale) and
    # x / temp go through bf16 on the MXU (accumulation stays f32)
    assert jnp.allclose(out, ref, atol=2e-2, rtol=2e-2), f"max abs err {max_err}"

    print("KERNEL_OK")
</pallas_src>

<mosaic_0001>
module attributes {stable_mosaic.version = 11 : i64} {
  func.func @fidelity_r_kernel(%arg0: i32, %arg1: i32, %arg2: memref<2x256xbf16, #tpu.memory_space<vmem>>, %arg3: memref<2x128xf32, #tpu.memory_space<vmem>>, %arg4: memref<1x128xf32, #tpu.memory_space<vmem>>, %arg5: memref<128x256xi8, #tpu.memory_space<vmem>>, %arg6: memref<1x2x256xf32, #tpu.memory_space<vmem>>, %arg7: memref<2x256xf32, #tpu.memory_space<vmem>>) attributes {dimension_semantics = [#tpu.dimension_semantics<parallel>, #tpu.dimension_semantics<arbitrary>], iteration_bounds = array<i64: 2, 2>, scalar_prefetch = 0 : i64, scratch_operands = 1 : i64, tpu.core_type = #tpu.core_type<tc>, window_params = [{pipeline_mode = #tpu.pipeline_mode<synchronous>, transform_indices = @transform_0, window_bounds = array<i64: 2, 256>}, {transform_indices = @transform_1, window_bounds = array<i64: 2, 128>}, {transform_indices = @transform_2, window_bounds = array<i64: 1, 128>}, {transform_indices = @transform_3, window_bounds = array<i64: 128, 256>}, {transform_indices = @transform_4, window_bounds = array<i64: 1, 2, 256>}]} {
    %c0_i32 = arith.constant 0 : i32
    %0 = arith.cmpi eq, %arg1, %c0_i32 : i32
    %1 = arith.extui %0 : i1 to i32
    %c0_i32_0 = arith.constant 0 : i32
    %2 = arith.cmpi ne, %1, %c0_i32_0 : i32
    scf.if %2 {
      %cst_14 = arith.constant 0.000000e+00 : f32
      %22 = vector.broadcast %cst_14 : f32 to vector<2x256xf32>
      %c0_15 = arith.constant 0 : index
      %c0_16 = arith.constant 0 : index
      %23 = vector.load %arg7[%c0_15, %c0_16] : memref<2x256xf32, #tpu.memory_space<vmem>>, vector<2x256xf32>
      tpu.vector_store %arg7[%c0_15, %c0_16], %22 {strides = array<i32>} : memref<2x256xf32, #tpu.memory_space<vmem>>, vector<2x256xf32>,
    } else {
    }
    %c0 = arith.constant 0 : index
    %c0_1 = arith.constant 0 : index
    %3 = vector.load %arg5[%c0, %c0_1] : memref<128x256xi8, #tpu.memory_space<vmem>>, vector<128x256xi8>
    %4 = arith.sitofp %3 : vector<128x256xi8> to vector<128x256xbf16>
    %c0_2 = arith.constant 0 : index
    %c0_3 = arith.constant 0 : index
    %5 = vector.load %arg4[%c0_2, %c0_3] : memref<1x128xf32, #tpu.memory_space<vmem>>, vector<1x128xf32>
    %c0_4 = arith.constant 0 : index
    %c0_5 = arith.constant 0 : index
    %6 = vector.load %arg2[%c0_4, %c0_5] : memref<2x256xbf16, #tpu.memory_space<vmem>>, vector<2x256xbf16>
    %cst = arith.constant dense<0.000000e+00> : vector<2x128xf32>
    %7 = tpu.matmul %6, %4, %cst {dimension_numbers = #tpu.dot_dimension_numbers<[1], [1], [0], [0], [0, 0, 1, 0], [], []>} : vector<2x256xbf16>, vector<128x256xbf16>, vector<2x128xf32> -> vector<2x128xf32>
    %8 = vector.broadcast %5 : vector<1x128xf32> to vector<2x128xf32>
    %9 = arith.mulf %7, %8 : vector<2x128xf32>
    %c0_6 = arith.constant 0 : index
    %c0_7 = arith.constant 0 : index
    %10 = vector.load %arg3[%c0_6, %c0_7] : memref<2x128xf32, #tpu.memory_space<vmem>>, vector<2x128xf32>
    %11 = arith.subf %9, %10 : vector<2x128xf32>
    %12 = vector.broadcast %5 : vector<1x128xf32> to vector<2x128xf32>
    %13 = arith.mulf %11, %12 : vector<2x128xf32>
    %14 = arith.truncf %13 : vector<2x128xf32> to vector<2x128xbf16>
    %c0_8 = arith.constant 0 : index
    %c0_9 = arith.constant 0 : index
    %15 = vector.load %arg7[%c0_8, %c0_9] : memref<2x256xf32, #tpu.memory_space<vmem>>, vector<2x256xf32>
    %cst_10 = arith.constant dense<0.000000e+00> : vector<2x256xf32>
    %16 = tpu.matmul %14, %4, %cst_10 {dimension_numbers = #tpu.dot_dimension_numbers<[1], [0], [0], [1], [0, 0, 1, 1], [], []>} : vector<2x128xbf16>, vector<128x256xbf16>, vector<2x256xf32> -> vector<2x256xf32>
    %17 = arith.addf %15, %16 : vector<2x256xf32>
    %c0_11 = arith.constant 0 : index
    %c0_12 = arith.constant 0 : index
    %18 = vector.load %arg7[%c0_11, %c0_12] : memref<2x256xf32, #tpu.memory_space<vmem>>, vector<2x256xf32>
    tpu.vector_store %arg7[%c0_11, %c0_12], %17 {strides = array<i32>} : memref<2x256xf32, #tpu.memory_space<vmem>>, vector<2x256xf32>,
    %c1_i32 = arith.constant 1 : i32
    %19 = arith.cmpi eq, %arg1, %c1_i32 : i32
    %20 = arith.extui %19 : i1 to i32
    %c0_i32_13 = arith.constant 0 : i32
    %21 = arith.cmpi ne, %20, %c0_i32_13 : i32
    scf.if %21 {
      %c0_14 = arith.constant 0 : index
      %c0_15 = arith.constant 0 : index
      %22 = vector.load %arg7[%c0_14, %c0_15] : memref<2x256xf32, #tpu.memory_space<vmem>>, vector<2x256xf32>
      %c0_16 = arith.constant 0 : index
      %c0_17 = arith.constant 0 : index
      %c0_18 = arith.constant 0 : index
      %23 = vector.load %arg6[%c0_16, %c0_17, %c0_18] : memref<1x2x256xf32, #tpu.memory_space<vmem>>, vector<1x2x256xf32>
      %24 = vector.shape_cast %23 : vector<1x2x256xf32> to vector<2x256xf32>
      %25 = vector.shape_cast %22 : vector<2x256xf32> to vector<1x2x256xf32>
      tpu.vector_store %arg6[%c0_16, %c0_17, %c0_18], %25 {strides = array<i32>} : memref<1x2x256xf32, #tpu.memory_space<vmem>>, vector<1x2x256xf32>,
    } else {
    }
    return
  }
  func.func @transform_0(%arg0: i32, %arg1: i32) -> (i32, i32) {
    %c0_i32 = arith.constant 0 : i32
    %c0_i32_0 = arith.constant 0 : i32
    %c0_i32_1 = arith.constant 0 : i32
    return %c0_i32, %c0_i32_0 : i32, i32
  }
  func.func @transform_1(%arg0: i32, %arg1: i32) -> (i32, i32) {
    %c2_i32 = arith.constant 2 : i32
    %0 = arith.muli %arg0, %c2_i32 : i32
    %1 = arith.addi %0, %arg1 : i32
    %c0_i32 = arith.constant 0 : i32
    %c0_i32_0 = arith.constant 0 : i32
    return %c0_i32, %1 : i32, i32
  }
  func.func @transform_2(%arg0: i32, %arg1: i32) -> (i32, i32) {
    %c2_i32 = arith.constant 2 : i32
    %0 = arith.muli %arg0, %c2_i32 : i32
    %1 = arith.addi %0, %arg1 : i32
    %c0_i32 = arith.constant 0 : i32
    %c0_i32_0 = arith.constant 0 : i32
    return %c0_i32, %1 : i32, i32
  }
  func.func @transform_3(%arg0: i32, %arg1: i32) -> (i32, i32) {
    %c2_i32 = arith.constant 2 : i32
    %0 = arith.muli %arg0, %c2_i32 : i32
    %1 = arith.addi %0, %arg1 : i32
    %c0_i32 = arith.constant 0 : i32
    %c0_i32_0 = arith.constant 0 : i32
    return %1, %c0_i32 : i32, i32
  }
  func.func @transform_4(%arg0: i32, %arg1: i32) -> (i32, i32, i32) {
    %c0_i32 = arith.constant 0 : i32
    %c0_i32_0 = arith.constant 0 : i32
    %c0_i32_1 = arith.constant 0 : i32
    return %arg0, %c0_i32, %c0_i32_0 : i32, i32, i32
  }
}

</mosaic_0001>

<bundles_post_ra>
// kernel: tpu_custom_call.1
= control target key start
LH: loop header
LB: loop body
LE: loop exit
PB: predicated region body
PF: predicated region fallthrough
CT: control target
= control target key end

     0   :  { %s1398_s0 = inlined_call_operand.hbm [shape: bf16[2,256], index: 0, kind: input, shape index: {}]   ;;  %s1399_s1 = inlined_call_operand.hbm [shape: f32[2,512], index: 1, kind: input, shape index: {}]   ;;  %s1400_s2 = inlined_call_operand.hbm [shape: f32[1,512], index: 2, kind: input, shape index: {}]   ;;  %s1401_s3 = inlined_call_operand.hbm [shape: s8[512,256], index: 3, kind: input, shape index: {}]   ;;  %s1402_s4 = inlined_call_operand.hbm [shape: f32[2,2,256], index: 4, kind: output, shape index: {}]  }
   0x1   :  { %1413 = sst [smem:[#allocation23_spill]] %s1398_s0 }
   0x2   :  { %1414 = sst [smem:[#allocation24_spill]] %s1399_s1 }
   0x3   :  { %1415 = sst [smem:[#allocation25_spill]] %s1400_s2 }
   0x4   :  { %1416 = sst [smem:[#allocation26_spill]] %s1401_s3 }
   0x5   :  { %1417 = sst [smem:[#allocation27_spill]] %s1402_s4 }
   0x6   :  { %9 = vsyncpa [#allocation4], 0 }
   0x7   :  { %10 = vsyncpa [#allocation7], 0 }
   0x8   :  { %12 = vsyncpa [#allocation7 + $0x1], 0 }
   0x9   :  { %13 = vsyncpa [#allocation10], 0 }
   0xa   :  { %15 = vsyncpa [#allocation10 + $0x1], 0 }
   0xb   :  { %16 = vsyncpa [#allocation5], 0 }
   0xc   :  { %18 = vsyncpa [#allocation5 + $0x1], 0  ;;  %s1101_s15 = smov 0   ;;  %s1103_s16 = smov 0  }
   0xd   :  { %s1105_s17 = smov 0   ;;  %s1107_s18 = smov 0  }
   0xe   :  { %s1109_s19 = smov 0   ;;  %s1111_s20 = smov 0  }
   0xf   :  { %s1113_s21 = smov 0   ;;  %s1115_s22 = smov 0  }
  0x10   :  { %s1117_s23 = smov 0   ;;  %s1119_s24 = smov 0  }
  0x11   :  { %s1121_s25 = smov 0  }
  0x12 LB: > { %1418 = sst [smem:[#allocation16_spill]] %s1047_s21  ;;  %s33_s26 = sadd.s32 1, %s1055_s23  ;;  %s1063_s25 = sphi %s1121_s25, %s24_s25   ;;  %s1059_s24 = sphi %s1119_s24, %s1453_s24   ;;  %s1055_s23 = sphi %s1117_s23, %s1452_s23   ;;  %s1051_s22 = sphi %s1115_s22, %s1451_s22   ;;  %s1047_s21 = sphi %s1113_s21, %s1450_s21   ;;  %s1043_s20 = sphi %s1111_s20, %s1459_s20   ;;  %s1039_s19 = sphi %s1109_s19, %s1458_s19   ;;  %s1035_s18 = sphi %s1107_s18, %s1457_s18   ;;  %s1031_s17 = sphi %s1105_s17, %s1456_s17   ;;  %s1027_s16 = sphi %s1103_s16, %s1455_s16   ;;  %s1023_s15 = sphi %s1101_s15, %s1454_s15  }
  0x13   : > { %1419 = sst [smem:[#allocation17_spill]] %s1051_s22  ;;  %s36_s27 = sadd.s32 1, %s1059_s24 }
  0x14   : > { %1420 = sst [smem:[#allocation18_spill]] %s1055_s23  ;;  %p34_p0 = scmp.ge.s32.totalorder %s33_s26, 2 }
  0x15   : > { %1421 = sst [smem:[#allocation19_spill]] %s1059_s24  ;;  %s660_s28 = sshll.u32 %s1059_s24, 1 }
  0x16   : > { %s1160_s29 = sadd.s32 %s1055_s23, %s660_s28  ;;  %s68_s30 = sadd.s32 1, %s1043_s20 }
  0x17   : > { %s1461_s26 = smov (%p34_p0, %s33_s26), 0  ;;  %s1463_s27 = smov (!%p34_p0, %s36_s27), %s1059_s24 }
  0x18   : > { %1422 = sst [smem:[#allocation20_spill]] %s1461_s26  ;;  %p75_p1 = scmp.ne.s32.totalorder %s1043_s20, %s1039_s19 }
  0x19   : > { %p76_p2 = scmp.eq.s32.totalorder %s1063_s25, 0  ;;  %p38_p3 = scmp.ge.s32.totalorder %s1463_s27, 2 }
  0x1a   : > { %p727_p5 = scmp.lt.s32.totalorder %s1063_s25, 4  ;;  %s202_s6 = sand.u32 1, %s1063_s25  }
  0x1b   : > { %p1169_p4 = por %p76_p2, %p75_p1  ;;  %s1465_s27 = smov (%p38_p3, %s1463_s27), 0 }
  0x1c   : > { %1424 = sst [smem:[#allocation21_spill]] %s1465_s27  ;;  %s1178_s7 = sand.u32 1, %s1043_s20  }
  0x1d   : > { %s661_s8 = sshll.u32 %s1465_s27, 1  ;;  %s151_s9 = ssub.s32 %s1059_s24, %s1465_s27 }
  0x1e   : > { %s64_s10 = sadd.s32 %s661_s8, %s1461_s26  ;;  %p1184_p6 = scmp.eq.s32.totalorder %s151_s9, 0 }
  0x1f   : > { %s65_s12 = ssub.s32 %s1160_s29, %s64_s10  ;;  %s669_s13 = sshll.u32 %s1178_s7, 1 }
  0x20   : > { %p66_p7 = scmp.eq.s32.totalorder %s65_s12, 0  ;;  %s671_s14 = sshll.u32 %s1160_s29, 5 }
  0x21   : > { %s1427_s1 = sld [smem:[#allocation24_spill]]  ;;  %s206_s21 = scalar_lea.vmem [#allocation6], %s669_s13 }
  0x22   : > { %s1192_s28 = scalar_select %p66_p7, %s1043_s20, %s68_s30  }
  0x23   : > { %s215_s3 = sshll.u32 %s206_s21, 4  ;;  %p1201_p8 = pnand %p727_p5, %p1169_p4  ;;  %s216_s3 = int_to_ptr.vmem [resolvable:$true] %s215_s3 }
  0x24   : > { %1426 = sst [smem:[#allocation22_spill]] %s1192_s28  ;;  %s1205_s9 = scalar_lea.sflag [#allocation7], %s202_s6 }
  0x25   : > { %p1406_p9 = pneg %p1201_p8  ;;  %s838_s30 = scalar_lea.vmem %s216_s3, 32 }
  0x26   : > { %p839_p10 = scmp.ne.s32.totalorder %s216_s3, %s838_s30  ;;  %s1065_s4 = smov [#allocation6]  }
  0x27   : > { %s213_s22 = scalar_lea.hbm %s1427_s1, %s671_s14  ;;  %s843_s21 = sshll.u32 %s1065_s4, 4  ;;  %s844_s21 = int_to_ptr.vmem [resolvable:$false] %s843_s21 }
  0x28   : > { %p841_p11 = pnand %p839_p10, %p1406_p9  ;;  %s845_s23 = scalar_lea.vmem %s844_s21, 64 }
  0x29   : > { %p846_p13 = scmp.lt.s32.totalorder %s216_s3, %s844_s21  ;;  %p847_p0 = scmp.lt.s32.totalorder %s845_s23, %s838_s30 }
  0x2a   : > { %p842_p12 = pneg %p841_p11 }
  0x2b   : > { %p848_p1 = por %p847_p0, %p846_p13 }
  0x2d   : > { %p849_p2 = pnand %p848_p1, %p842_p12 }
  0x2f   : > { %852 = shalt.err (!%p849_p2)
}
  0x30   : > { %715 = dma.hbm_to_vmem [thread:$0]  (!%p1201_p8), %s213_s22, 32, %s216_s3, %s1205_s9  }
  0x31   : > { %s1216_s5 = sadd.s32 4294967295, %s1063_s25   ;;  %s659_s6 = sadd.s32 4294967294, %s1063_s25  }
  0x32   : > { %p81_p3 = scmp.ne.s32.totalorder %s1039_s19, %s1035_s18  ;;  %p1408_p4 = scmp.eq.s32.totalorder %s1216_s5, 0 }
  0x33   : > { %s154_s10 = sadd.s32 1, %s1031_s17  ;;  %p164_p7 = scmp.ne.s32.totalorder %s1031_s17, %s1027_s16 }
  0x34   : > { %s1226_s12 = scalar_select %p1184_p6, %s1031_s17, %s154_s10  }
  0x35   : > { %p1230_p5 = por %p1408_p4, %p81_p3  ;;  %p165_p10 = scmp.eq.s32.totalorder %s1216_s5, 3 }
  0x36   : > { %p170_p11 = scmp.ne.s32.totalorder %s1027_s16, %s1023_s15  ;;  %p171_p12 = scmp.eq.s32.totalorder %s659_s6, 3 }
  0x37   : > { %s1429_s13 = scalar_select %p1230_p5, 1, 0 }
  0x38   : > { %p666_p13 = scmp.ge.s32.totalorder %s1063_s25, 1  ;;  %p1240_p0 = por %p165_p10, %p164_p7 }
  0x39   : > { %p178_p1 = scmp.lt.s32.totalorder %s1063_s25, 5  ;;  %p1245_p6 = por %p171_p12, %p170_p11 }
  0x3a   : > { %s1430_s3 = scalar_select %p1240_p0, 1, 0 }
  0x3b   : > { %s1431_s18 = scalar_select %p1245_p6, 1, 0 }
  0x3c   : > { %p1249_p2 = pnand %p666_p13, %p178_p1  ;;  %s1066_s11 = smov [#allocation3]  }
  0x3d   : > { %s191_s14 = sshll.u32 %s1066_s11, 4  ;;  %s673_s30 = sshll.u32 %s1160_s29, 4  ;;  %s192_s14 = int_to_ptr.vmem [resolvable:$true] %s191_s14 }
  0x3e   : > { %s1432_s22 = scalar_select %p1249_p2, 1, 0 }
  0x3f   : > { %p708_p3 = pneg %p1249_p2  ;;  %s225_s4 = scalar_lea.vmem [#allocation8], %s1178_s7 }
  0x40   : > { %s234_s21 = sshll.u32 %s225_s4, 4  ;;  %s1434_s2 = sld [smem:[#allocation25_spill]]  ;;  %s235_s21 = int_to_ptr.vmem [resolvable:$true] %s234_s21 }
  0x41   : > { %p1259_p7 = pnand %p708_p3, %p1408_p4  ;;  %s674_s27 = sshll.u32 %s1178_s7, 6 }
  0x42   : > { %s864_s11 = scalar_lea.vmem %s192_s14, 32  ;;  %p872_p1 = scmp.lt.s32.totalorder %s192_s14, %s192_s14 }
  0x43   : > { %p855_p10 = pneg %p1259_p7  ;;  %p865_p11 = scmp.ne.s32.totalorder %s192_s14, %s864_s11 }
  0x44   : > { %p873_p9 = scmp.lt.s32.totalorder %s864_s11, %s864_s11 }
  0x45   : > { %p867_p12 = pnand %p865_p11, %p855_p10 }
  0x46   : > { %s232_s1 = scalar_lea.hbm %s1434_s2, %s673_s30  ;;  %p874_p6 = por %p873_p9, %p872_p1 }
  0x47   : > { %p868_p13 = pneg %p867_p12 }
  0x49   : > { %p875_p3 = pnand %p874_p6, %p868_p13 }
  0x4b   : > { %878 = shalt.err (!%p875_p3)
}
  0x4c   : > { %s1435_s0 = sld [smem:[#allocation23_spill]]  ;;  %s892_s30 = scalar_lea.vmem %s235_s21, 16 }
  0x4d   : > { %p893_p4 = scmp.ne.s32.totalorder %s235_s21, %s892_s30  ;;  %p1436_p0 = pneg %p1201_p8 }
  0x4e   : > { %s1067_s6 = smov [#allocation8]  }
  0x4f   : > { %p895_p5 = pnand %p893_p4, %p1436_p0  ;;  %s897_s10 = sshll.u32 %s1067_s6, 4  ;;  %s898_s10 = int_to_ptr.vmem [resolvable:$false] %s897_s10 }
  0x50   : > { %s899_s11 = scalar_lea.vmem %s898_s10, 32  ;;  %p900_p9 = scmp.lt.s32.totalorder %s235_s21, %s898_s10 }
  0x51   : > { %p896_p2 = pneg %p895_p5  ;;  %p901_p6 = scmp.lt.s32.totalorder %s899_s11, %s892_s30 }
  0x52   : > { %711 = dma.hbm_to_vmem [thread:$0]  (!%p1259_p7), %s1435_s0, 32, %s192_s14, [#allocation4]  }
  0x53   : > { %p902_p10 = por %p901_p6, %p900_p9 }
  0x55   : > { %p903_p11 = pnand %p902_p10, %p896_p2 }
  0x57   : > { %906 = shalt.err (!%p903_p11)
}
  0x58   : > { %718 = dma.hbm_to_vmem [thread:$0]  (!%p1201_p8), %s232_s1, 16, %s235_s21, %s1205_s9  }
  0x59   : > { %s694_s26 = sshll.u32 %s1160_s29, 10  ;;  %s1437_s4 = sld [smem:[#allocation26_spill]] }
  0x5a   : > { %s245_s6 = scalar_lea.vmem [#allocation9], %s674_s27  ;;  %s242_s10 = scalar_lea.sflag [#allocation10], %s1178_s7 }
  0x5b   : > { %s255_s2 = sshll.u32 %s245_s6, 4  ;;  %p1438_p5 = pmov %p1436_p0  ;;  %s256_s2 = int_to_ptr.vmem [resolvable:$true] %s255_s2 }
  0x5c   : > { %s920_s30 = scalar_lea.vmem %s256_s2, 1024  ;;  %s1068_s11 = smov [#allocation9]  }
  0x5d   : > { %p921_p4 = scmp.ne.s32.totalorder %s256_s2, %s920_s30  ;;  %s925_s24 = sshll.u32 %s1068_s11, 4  ;;  %s926_s24 = int_to_ptr.vmem [resolvable:$false] %s925_s24 }
  0x5e   : > { %s927_s28 = scalar_lea.vmem %s926_s24, 2048  ;;  %p928_p7 = scmp.lt.s32.totalorder %s256_s2, %s926_s24 }
  0x5f   : > { %s254_s0 = scalar_lea.hbm %s1437_s4, %s694_s26  ;;  %p923_p0 = pnand %p921_p4, %p1438_p5 }
  0x60   : > { %p929_p12 = scmp.lt.s32.totalorder %s927_s28, %s920_s30 }
  0x61   : > { %p924_p2 = pneg %p923_p0 }
  0x62   : > { %p930_p13 = por %p929_p12, %p928_p7 }
  0x64   : > { %p931_p1 = pnand %p930_p13, %p924_p2 }
  0x66   : > { %934 = shalt.err (!%p931_p1)
}
  0x67   : > { %s1069_s1 = smov 256   ;;  %s1070_s27 = smov 16  }
  0x68   : > { %721 = dma.hbm_to_vmem [thread:$0]  (!%p1201_p8), %s254_s0, 1024, %s256_s2, %s242_s10, %s1069_s1, %s1069_s1, %s1070_s27  }
  0x69   : > { %p1439_p3 = scmp.ne.s32.totalorder %s1432_s22, 0 }
  0x6a   : > { %p1440_p9 = scmp.eq.s32.totalorder (!%p1439_p3), %s1216_s5, 0 }
  0x6b   : > { %267 = sbr.rel (%p1439_p3) target bundleno = 640 (0x280), region = 36 }
  0x70   : > { %1006 = dma.done.wait (%p1440_p9), [#allocation4], 32   ;;  %p1441_p6 = pmov %p1440_p9 }
  0x71   : > { %s273_s24 = sand.u32 1, %s1216_s5   ;;  %s1298_s29 = sand.u32 1, %s1039_s19  }
  0x72   : > { %1008 = vsyncadd (%p1441_p6), [#allocation4], 4294967264  ;;  %s681_s7 = sshll.u32 %s1298_s29, 1  ;;  %s274_s28 = scalar_lea.sflag [#allocation7], %s273_s24 }
  0x73   : > { %s1301_s8 = scalar_lea.vmem [#allocation6], %s681_s7  ;;  %p1442_p8 = scmp.ne.s32.totalorder %s1429_s13, 0 }
  0x75   : > { %1010 = dma.done.wait (%p1442_p8), %s274_s28, 48  }
  0x76   : > { %1012 = vsyncadd (%p1442_p8), %s274_s28, 4294967248  ;;  %s682_s0 = sshll.u32 %s1298_s29, 6  ;;  %s285_s2 = scalar_lea.vmem [#allocation8], %s1298_s29 }
  0x77   : > { %s291_s9 = scalar_lea.sflag [#allocation10], %s1298_s29  ;;  %s1310_s5 = scalar_lea.vmem [#allocation9], %s682_s0 }
  0x78   : > { %1014 = dma.done.wait (%p1442_p8), %s291_s9, 1024  }
  0x79   : > { %1016 = vsyncadd (%p1442_p8), %s291_s9, 4294966272  ;;  %s325_s22 = sand.u32 1, %s1027_s16   ;;  %s1443_s14 = sld [smem:[#allocation16_spill]] }
  0x7a   : > { %s1319_s21 = sshll.u32 %s325_s22, 2 }
  0x7b   : > { %s327_s26 = scalar_lea.vmem [#allocation11], %s1319_s21 }
  0x7f   : > { %p684_p10 = scmp.ne.s32.totalorder %s1443_s14, 0 }
  0x81   : > { %339 = sbr.rel (%p684_p10) target bundleno = 136 (0x88), region = 56 }
  0x86   : > { %v1071_v0 = vmov 0.0  }
  0x87   : > { %340 = vst [vmem:[#allocation2] sm:$0xf] %v1071_v0 }
  0x88 PF: > { %v348_v1 = vld [vmem:[%s1310_s5 + $0x38] sm:$0xff]  ;;  %v347_v2 = vld [vmem:[%s1310_s5 + $0x30] sm:$0xff]  ;;  %v379_v6 = vlaneseq  ;;  %v346_v7 = vld [vmem:[%s1310_s5 + $0x28] sm:$0xff]  ;;  %v1072_v9 = vmov 1966171168   ;;  %v1073_v35 = vmov 0  }
  0x89   : > { %v362_v3 = vunpack.c.l.s8.bf16 %v348_v1  ;;  %v364_v4 = vunpack.c.h.s8.bf16 %v348_v1  ;;  %v363_v5 = vunpack.c.h.s8.bf16 %v347_v2  ;;  %v685_v8 = vld.sshfl [vmem:[#allocation3] sm:$0x11 pattern:$0x75316420]  ;;  %v377_v10 = vunpack.c.l.s4 %v1072_v9  ;;  %v345_v14 = vld [vmem:[%s1310_s5 + $0x20] sm:$0xff]  ;;  %v343_v24 = vld [vmem:[%s1310_s5 + $0x10] sm:$0xff]  ;;  %476 = vmatprep.mubr.bf16.mxu1 %v1073_v35 }
  0x8a   : > { %v1326_v11 = vshrl.u32 %v379_v6, 7  ;;  %v361_v12 = vunpack.c.l.s8.bf16 %v347_v2  ;;  %v360_v13 = vunpack.c.h.s8.bf16 %v346_v7  ;;  %v375_v15 = vcombine.high %v685_v8, %v685_v8  ;;  %v344_v21 = vld [vmem:[%s1310_s5 + $0x18] sm:$0xff]  ;;  %v342_v27 = vld [vmem:[%s1310_s5 + $0x8] sm:$0xff]  ;;  %v341_v30 = vld [vmem:[%s1310_s5] sm:$0xff]  ;;  %s1444_s13 = sld [smem:[#allocation16_spill]] }
  0x8b   : > { %392 = vmatprep.subr.bf16.mxu0 %v364_v4  ;;  %444 = vmatprep.subr.bf16.mxu1 %v364_v4  ;;  %v378_v16 = vunpack.c.0.s8 %v377_v10  ;;  %v359_v18 = vunpack.c.h.s8.bf16 %v345_v14  ;;  %v358_v20 = vunpack.c.l.s8.bf16 %v346_v7  ;;  %v357_v22 = vunpack.c.l.s8.bf16 %v345_v14  ;;  %v686_v36 = vld [vmem:[%s285_s2] ss:$0 sm:$0xff]  ;;  %v439_v38 = vld [vmem:[%s1301_s8] sm:$0x3] }
  0x8c   : > { %393 = vmatpush1.bf16.xpose.msra.mxu0 %v363_v5  ;;  %445 = vmatpush1.bf16.msra.mxu1 %v363_v5  ;;  %v356_v23 = vunpack.c.h.s8.bf16 %v344_v21  ;;  %v355_v25 = vunpack.c.h.s8.bf16 %v343_v24  ;;  %v354_v26 = vunpack.c.l.s8.bf16 %v344_v21  ;;  %v353_v28 = vunpack.c.l.s8.bf16 %v343_v24 }
  0x8d   : > { %394 = vmatprep.subr.bf16.mxu0 %v362_v3  ;;  %446 = vmatprep.subr.bf16.mxu1 %v362_v3  ;;  %v381_v17 = vsub.s32 %v378_v16, %v1326_v11  ;;  %v352_v29 = vunpack.c.h.s8.bf16 %v342_v27  ;;  %v351_v31 = vunpack.c.h.s8.bf16 %v341_v30  ;;  %v350_v32 = vunpack.c.l.s8.bf16 %v342_v27 }
  0x8e   : > { %v349_v33 = vunpack.c.l.s8.bf16 %v341_v30  ;;  %v1074_v46 = vmov 1983009808   ;;  %v443_v53 = vld [vmem:[#allocation2] sm:$0xf] }
  0x8f   : > { %v389_v19 = vrot.slane %v375_v15, %v381_v17  ;;  %v382_v34 = vrot.slane %v685_v8, %v381_v17  ;;  %v489_v47 = vunpack.c.l.s4 %v1074_v46 }
  0x90   : > { %447 = vmatpush1.bf16.msra.mxu1 %v361_v12  ;;  %p687_p11 = scmp.ne.s32.totalorder %s1444_s13, 1 }
  0x91   : > { %448 = vmatprep.subr.bf16.mxu1 %v360_v13  ;;  %424 = vmatprep.mubr.bf16.mxu0 %v389_v19  ;;  %v490_v48 = vunpack.c.0.s8 %v489_v47 }
  0x93   : > { %v493_v50 = vsub.s32 %v490_v48, %v1326_v11 }
  0x94   : > { %395 = vmatpush1.bf16.xpose.msra.mxu0 %v361_v12  ;;  %449 = vmatpush1.bf16.msra.mxu1 %v359_v18 }
  0x95   : > { %396 = vmatprep.subr.bf16.mxu0 %v360_v13  ;;  %450 = vmatprep.subr.bf16.mxu1 %v358_v20 }
  0x98   : > { %451 = vmatpush1.bf16.msra.mxu1 %v357_v22 }
  0x99   : > { %452 = vmatprep.subr.bf16.mxu1 %v356_v23 }
  0x9c   : > { %397 = vmatpush1.bf16.xpose.msra.mxu0 %v359_v18  ;;  %453 = vmatpush1.bf16.msra.mxu1 %v355_v25 }
  0x9d   : > { %398 = vmatprep.subr.bf16.mxu0 %v358_v20  ;;  %454 = vmatprep.subr.bf16.mxu1 %v354_v26 }
  0xa0   : > { %455 = vmatpush1.bf16.msra.mxu1 %v353_v28 }
  0xa1   : > { %456 = vmatprep.subr.bf16.mxu1 %v352_v29 }
  0xa4   : > { %399 = vmatpush1.bf16.xpose.msra.mxu0 %v357_v22  ;;  %457 = vmatpush1.bf16.msra.mxu1 %v351_v31 }
  0xa5   : > { %400 = vmatprep.subr.bf16.mxu0 %v356_v23  ;;  %458 = vmatprep.subr.bf16.mxu1 %v350_v32 }
  0xa8   : > { %459 = vmatpush1.bf16.msra.mxu1 %v349_v33 }
  0xac   : > { %401 = vmatpush1.bf16.xpose.msra.mxu0 %v355_v25 }
  0xad   : > { %402 = vmatprep.subr.bf16.mxu0 %v354_v26 }
  0xb4   : > { %403 = vmatpush1.bf16.xpose.msra.mxu0 %v353_v28 }
  0xb5   : > { %404 = vmatprep.subr.bf16.mxu0 %v352_v29 }
  0xbc   : > { %405 = vmatpush1.bf16.xpose.msra.mxu0 %v351_v31 }
  0xbd   : > { %406 = vmatprep.subr.bf16.mxu0 %v350_v32 }
  0xc4   : > { %407 = vmatpush1.bf16.xpose.msra.mxu0 %v349_v33 }
  0xcb   : > { %425 = vmatmul.mubr.bf16.vlgmr.msra.gmra.mxu0 %v382_v34 }
 0x18b   : > { %v426_v37 = vpop.f32.mrf.mxu0 }
 0x18c   : > { %v438_v39 = vmul.f32 %v686_v36, %v426_v37 }
 0x18d   : > { %v428_v40 = vpop.f32.mrf.mxu0 }
 0x18e   : > { %v440_v41 = vsub.f32 %v438_v39, %v439_v38 }
 0x18f   : > { %v429_v42 = vpop.f32.mrf.mxu0 }
 0x190   : > { %v441_v43 = vmul.f32 %v686_v36, %v440_v41 }
 0x191   : > { %v430_v44 = vpop.f32.mrf.mxu0 }
 0x192   : > { %v442_v45 = vpack.c.bf16 %v441_v43, %v441_v43 }
 0x194   : > { %477 = vmatmul.mubr.bf16.vlgmr.msra.gmra.mxu1 %v442_v45 }
 0x254   : > { %v478_v49 = vpop.f32.mrf.mxu1 }
 0x256   : > { %v480_v51 = vpop.f32.mrf.mxu1 }
 0x257   : > { %v487_v52 = vcombine.low %v478_v49, %v480_v51 }
 0x258   : > { %v482_v54 = vpop.f32.mrf.mxu1 }
 0x259   : > { %v494_v55 = vrot.slane %v487_v52, %v493_v50  ;;  %501 = sbr.rel (%p687_p11) target bundleno = 614 (0x266), region = 60 }
 0x25a   : > { %v483_v56 = vpop.f32.mrf.mxu1 }
 0x25b   : > { %v496_v57 = vadd.f32 %v494_v55, %v443_v53 }
 0x25d   : > { %497 = vst [vmem:[#allocation2] sm:$0xf] %v496_v57 }
 0x264   : > { %v502_v58 = vld [vmem:[#allocation2] sm:$0xf] }
 0x265   : > { %503 = vst [vmem:[%s327_s26] sm:$0xf] %v502_v58 }
 0x266 PF: > { %s1445_s23 = sld [smem:[#allocation17_spill]]  ;;  %s519_s1 = sshll.u32 %s327_s26, 4  ;;  %s520_s1 = int_to_ptr.vmem [resolvable:$true] %s519_s1 }
 0x267   : > { %s1446_s30 = sld [smem:[#allocation27_spill]]  ;;  %s505_s27 = scalar_lea.sflag [#allocation5], %s325_s22 }
 0x268   : > { %s935_s24 = scalar_lea.vmem %s520_s1, 64  ;;  %p1447_p5 = scmp.ne.s32.totalorder %s1430_s3, 0 }
 0x269   : > { %p936_p4 = scmp.ne.s32.totalorder %s520_s1, %s935_s24  ;;  %s1075_s29 = smov [#allocation11]  }
 0x26a   : > { %s939_s7 = sshll.u32 %s1075_s29, 4  ;;  %s940_s7 = int_to_ptr.vmem [resolvable:$false] %s939_s7 }
 0x26b   : > { %p937_p0 = pnand %p936_p4, %p1447_p5  ;;  %s941_s28 = scalar_lea.vmem %s940_s7, 128 }
 0x26c   : > { %s695_s4 = sshll.u32 %s1445_s23, 6  ;;  %p942_p7 = scmp.lt.s32.totalorder %s520_s1, %s940_s7 }
 0x26d   : > { %s517_s11 = scalar_lea.hbm %s1446_s30, %s695_s4  ;;  %p938_p2 = pneg %p937_p0 }
 0x26e   : > { %p943_p12 = scmp.lt.s32.totalorder %s941_s28, %s935_s24 }
 0x270   : > { %p944_p13 = por %p943_p12, %p942_p7 }
 0x272   : > { %p945_p1 = pnand %p944_p13, %p938_p2 }
 0x274   : > { %948 = shalt.err (!%p945_p1)
}
 0x275   : > { %s949_s8 = scalar_lea.hbm %s517_s11, 64  ;;  %s953_s9 = scalar_lea.hbm %s1446_s30, 128 }
 0x276   : > { %p950_p3 = scmp.ne.s32.totalorder %s517_s11, %s949_s8  ;;  %p954_p8 = scmp.lt.s32.totalorder %s517_s11, %s1446_s30 }
 0x277   : > { %p955_p10 = scmp.lt.s32.totalorder %s953_s9, %s949_s8 }
 0x278   : > { %p951_p9 = pnand %p950_p3, %p1447_p5 }
 0x279   : > { %p956_p11 = por %p955_p10, %p954_p8 }
 0x27a   : > { %p952_p6 = pneg %p951_p9 }
 0x27c   : > { %p957_p4 = pnand %p956_p11, %p952_p6 }
 0x27e   : > { %960 = shalt.err (!%p957_p4)
}
 0x27f   : > { %706 = dma.vmem_to_hbm [thread:$0]  (%p1447_p5), %s520_s1, 64, %s517_s11, %s505_s27  }
 0x280 PF: > { %p729_p0 = scmp.ge.s32.totalorder %s1063_s25, 2  ;;  %s531_s21 = sand.u32 1, %s1023_s15  }
 0x281   : > { %p1448_p2 = scmp.ne.s32.totalorder %s1431_s18, 0  ;;  %s532_s26 = scalar_lea.sflag [#allocation5], %s531_s21 }
 0x283   : > { %p723_p7 = pnand %p729_p0, %p1448_p2 }
 0x285   : > { %p724_p12 = pneg %p723_p7 }
 0x287   : > { %1018 = dma.done.wait (%p724_p12), %s532_s26, 64  }
 0x288   : > { %1020 = vsyncadd (%p724_p12), %s532_s26, 4294967232  ;;  %s24_s25 = sadd.s32 1, %s1063_s25   ;;  %s1449_s3 = sld [smem:[#allocation22_spill]] }
 0x289   : > { %p21_p13 = scmp.ge.s32.totalorder %s24_s25, 6   ;;  %s1450_s21 = sld [smem:[#allocation18_spill]] }
 0x28a   : > { %s1451_s22 = sld [smem:[#allocation19_spill]]  ;;  %s1454_s15 = smov %s1027_s16 }
 0x28b   : > { %s1452_s23 = sld [smem:[#allocation20_spill]]  ;;  %s1455_s16 = smov %s1031_s17 }
 0x28c   : > { %s1453_s24 = sld [smem:[#allocation21_spill]]  ;;  %s1456_s17 = smov %s1226_s12 }
 0x28d   : > { %s1457_s18 = smov %s1039_s19  ;;  %s1458_s19 = smov %s1043_s20 }
 0x28e   : > { %s1459_s20 = smov %s1449_s3  ;;  %23 = sbr.rel (!%p21_p13) target bundleno = 18 (0x12), region = 118 }
 0x293   :  { %537 = vsyncpa [#allocation4], 1 }
 0x294   :  { %539 = vsyncpa [#allocation4 + $0x1], 1 }
 0x295   :  { %540 = vsyncpa [#allocation7], 1 }
 0x296   :  { %542 = vsyncpa [#allocation7 + $0x1], 1 }
 0x297   :  { %543 = vsyncpa [#allocation10], 1 }
 0x298   :  { %545 = vsyncpa [#allocation10 + $0x1], 1 }
 0x299   :  { %546 = vsyncpa [#allocation5], 1 }
 0x29a   :  { %548 = vsyncpa [#allocation5 + $0x1], 1 }

</bundles_post_ra>
